<compile_context>
chip_gen: v7x
topology: tpu7x:2x2x1
jax: 0.10.0
libtpu: 0.0.40
codegen_flags: <defaults>
</compile_context>

<pallas_src>
import functools

import jax
import jax.numpy as jnp
from jax.experimental import pallas as pl
from jax.experimental.pallas import tpu as pltpu


def _round_up(x, m):
    return (x + m - 1) // m * m


def _physical_vmem_bytes():
    try:
        info = pltpu.get_tpu_info()
        cap = getattr(info, "vmem_capacity_bytes", None)
        if cap:
            return int(cap)
    except Exception:
        pass
    return 64 * 1024 * 1024  # conservative fallback: v7x physical VMEM per TC


def _tap_gemm_kernel(ph_ref, w_ref, b_ref, o_ref, *, r, wph, mp):
    """One batch element x one output-channel tile of the strided 3x3 conv.

    ph_ref: (1, r*r, C_in, Mp_ext)  stride-phase planes, flattened padded spatial
    w_ref : (9, tile_co, C_in)      per-tap 1x1 weights (tap index = kh*3 + kw)
    b_ref : (tile_co, 1)            bias
    o_ref : (1, tile_co, Mp)        channel-major output block
    """
    loaded = {}
    acc = None
    for kh in range(3):
        for kw in range(3):
            t = kh * 3 + kw
            p = (kh % r) * r + (kw % r)       # which stride phase this tap reads
            s = (kh // r) * wph + (kw // r)   # static lane offset inside it
            if p not in loaded:
                loaded[p] = ph_ref[0, p, :, :]            # (C_in, Mp_ext)
            y = jnp.dot(w_ref[t, :, :], loaded[p],
                        preferred_element_type=jnp.float32)  # (tile_co, Mp_ext)
            y = y[:, s:s + mp]                # static window; no roll / concat
            acc = y if acc is None else acc + y
    o_ref[0, :, :] = (acc + b_ref[...]).astype(o_ref.dtype)


@functools.partial(jax.jit, static_argnames=("r",))
def downsample_forward(x_nchw, weight_oihw, bias, r):
    """Equivalent of Downsample.forward: nn.Conv2d(C, C, 3, stride=r, padding=1)."""
    n, c, h, w = x_nchw.shape
    ho = (h + 2 - 3) // r + 1
    wo = (w + 2 - 3) // r + 1
    d = 2 // r                        # max tap offset inside a phase plane
    hph, wph = ho + d, wo + d
    mp = hph * wph
    mp_ext = mp + d * wph + d         # room for the largest static tap window
    hp_pad = max(h + 2, r * hph)
    wp_pad = max(w + 2, r * wph)

    # conv padding=1 plus whatever extra zero rows/cols the phase split needs
    x_pad = jnp.pad(
        x_nchw, ((0, 0), (0, 0), (1, hp_pad - h - 1), (1, wp_pad - w - 1)))

    # stride-phase split: r*r planes, each (N, C, Hph, Wph), spatial flattened
    planes = []
    for ph in range(r):
        for pw in range(r):
            plane = x_pad[:, :, ph::r, pw::r][:, :, :hph, :wph]
            planes.append(plane.reshape(n, c, mp))
    phases = jnp.stack(planes, axis=1)                    # (N, r*r, C, Mp)
    if mp_ext > mp:
        phases = jnp.pad(phases, ((0, 0), (0, 0), (0, 0), (0, mp_ext - mp)))

    # weights: (Cout, Cin, 3, 3) -> (9, Cout, Cin), tap index = kh*3 + kw
    w_taps = jnp.transpose(weight_oihw, (2, 3, 0, 1)).reshape(9, c, c)

    # --- VMEM budgeting / output-channel tiling ------------------------------
    co_pad = _round_up(c, 8)
    phys_vmem = _physical_vmem_bytes()
    budget = min(int(phys_vmem * 0.6), 96 * 1024 * 1024)
    ph_block = r * r * c * _round_up(mp_ext, 128) * 4

    def working_set(tile_co):
        w_b = 9 * tile_co * _round_up(c, 128) * 4
        o_b = tile_co * _round_up(mp, 128) * 4
        # double-buffered blocks + in-kernel temporaries (loaded phases, acc, y)
        return 2 * (ph_block + w_b + o_b) + ph_block + 3 * o_b

    n_co = 1
    tile_co = co_pad
    while working_set(tile_co) > budget and tile_co > 8:
        n_co *= 2
        tile_co = _round_up(-(-co_pad // n_co), 8)
    co_alloc = n_co * tile_co

    w_taps = jnp.pad(w_taps, ((0, 0), (0, co_alloc - c), (0, 0)))
    b_col = jnp.pad(bias, (0, co_alloc - c)).reshape(co_alloc, 1)

    vmem_limit = int(min(phys_vmem - (8 << 20),
                         max(working_set(tile_co) + (8 << 20), 32 << 20)))
    vmem_limit = max(vmem_limit, 16 << 20)

    kernel = functools.partial(_tap_gemm_kernel, r=r, wph=wph, mp=mp)
    cost = pl.CostEstimate(
        flops=2 * 9 * n * co_alloc * c * mp,
        transcendentals=0,
        bytes_accessed=4 * (n_co * n * r * r * c * mp_ext
                            + 9 * co_alloc * c + n * co_alloc * mp),
    )

    out = pl.pallas_call(
        kernel,
        out_shape=jax.ShapeDtypeStruct((n, co_alloc, mp), x_nchw.dtype),
        grid_spec=pl.GridSpec(
            grid=(n_co, n),     # co-tile outer (weights stay resident), batch inner
            in_specs=[
                pl.BlockSpec((1, r * r, c, mp_ext), lambda j, b: (b, 0, 0, 0)),
                pl.BlockSpec((9, tile_co, c), lambda j, b: (0, j, 0)),
                pl.BlockSpec((tile_co, 1), lambda j, b: (j, 0)),
            ],
            out_specs=pl.BlockSpec((1, tile_co, mp), lambda j, b: (b, j, 0)),
        ),
        compiler_params=pltpu.CompilerParams(
            dimension_semantics=("parallel", "parallel"),
            vmem_limit_bytes=vmem_limit,
        ),
        cost_estimate=cost,
    )(phases, w_taps, b_col)

    # (N, co_alloc, Hph*Wph) -> NCHW, dropping channel / spatial padding
    out = out.reshape(n, co_alloc, hph, wph)[:, :c, :ho, :wo]
    return out


def _reference_conv(x_nchw, weight_oihw, bias, r):
    """Pure-JAX reference (lax conv) for correctness checking."""
    out = jax.lax.conv_general_dilated(
        x_nchw, weight_oihw,
        window_strides=(r, r), padding=((1, 1), (1, 1)),
        dimension_numbers=("NCHW", "OIHW", "NCHW"),
    )
    return out + bias.reshape(1, -1, 1, 1)


if __name__ == "__main__":
    # Downsample(n_channels=4, r=2), x: (2, 4, 16, 16)
    n_channels, r = 4, 2
    batch, spatial = 2, 16

    key = jax.random.PRNGKey(0)
    kx, kw, kb = jax.random.split(key, 3)

    x = jax.random.normal(kx, (batch, n_channels, spatial, spatial), dtype=jnp.float32)

    # Deterministic conv params (same shapes as nn.Conv2d(C, C, 3, r, 1)):
    fan_in = n_channels * 3 * 3
    bound = 1.0 / (fan_in ** 0.5)
    weight = jax.random.uniform(
        kw, (n_channels, n_channels, 3, 3), minval=-bound, maxval=bound,
        dtype=jnp.float32)
    bias = jax.random.uniform(
        kb, (n_channels,), minval=-bound, maxval=bound, dtype=jnp.float32)

    out = downsample_forward(x, weight, bias, r)
    out = jax.block_until_ready(out)

    ref = _reference_conv(x, weight, bias, r)
    assert out.shape == ref.shape, (out.shape, ref.shape)
    assert jnp.allclose(out, ref, atol=1e-5, rtol=1e-5), "mismatch vs reference conv"

    print("KERNEL_OK")
</pallas_src>

<mosaic_0001>
module attributes {stable_mosaic.version = 11 : i64} {
  func.func @_tap_gemm_kernel(%arg0: i32, %arg1: i32, %arg2: memref<1x4x4x91xf32, #tpu.memory_space<vmem>>, %arg3: memref<9x8x4xf32, #tpu.memory_space<vmem>>, %arg4: memref<8x1xf32, #tpu.memory_space<vmem>>, %arg5: memref<1x8x81xf32, #tpu.memory_space<vmem>>) attributes {dimension_semantics = [#tpu.dimension_semantics<parallel>, #tpu.dimension_semantics<parallel>], iteration_bounds = array<i64: 1, 2>, scalar_prefetch = 0 : i64, scratch_operands = 0 : i64, tpu.core_type = #tpu.core_type<tc>, window_params = [{transform_indices = @transform_0, window_bounds = array<i64: 1, 4, 4, 91>}, {transform_indices = @transform_1, window_bounds = array<i64: 9, 8, 4>}, {transform_indices = @transform_2, window_bounds = array<i64: 8, 1>}, {transform_indices = @transform_3, window_bounds = array<i64: 1, 8, 81>}]} {
    %c0 = arith.constant 0 : index
    %c0_0 = arith.constant 0 : index
    %c0_1 = arith.constant 0 : index
    %c0_2 = arith.constant 0 : index
    %0 = vector.load %arg2[%c0, %c0_0, %c0_1, %c0_2] : memref<1x4x4x91xf32, #tpu.memory_space<vmem>>, vector<1x1x4x91xf32>
    %1 = vector.shape_cast %0 : vector<1x1x4x91xf32> to vector<4x91xf32>
    %c0_3 = arith.constant 0 : index
    %c0_4 = arith.constant 0 : index
    %c0_5 = arith.constant 0 : index
    %2 = vector.load %arg3[%c0_3, %c0_4, %c0_5] : memref<9x8x4xf32, #tpu.memory_space<vmem>>, vector<1x8x4xf32>
    %3 = vector.shape_cast %2 : vector<1x8x4xf32> to vector<8x4xf32>
    %cst = arith.constant dense<0.000000e+00> : vector<8x91xf32>
    %4 = tpu.matmul %3, %1, %cst {dimension_numbers = #tpu.dot_dimension_numbers<[1], [0], [0], [1], [0, 0, 1, 1], [], []>} : vector<8x4xf32>, vector<4x91xf32>, vector<8x91xf32> -> vector<8x91xf32>
    %5 = vector.extract_strided_slice %4 {offsets = [0, 0], sizes = [8, 81], strides = [1, 1]} : vector<8x91xf32> to vector<8x81xf32>
    %c0_6 = arith.constant 0 : index
    %c1 = arith.constant 1 : index
    %c0_7 = arith.constant 0 : index
    %c0_8 = arith.constant 0 : index
    %6 = vector.load %arg2[%c0_6, %c1, %c0_7, %c0_8] : memref<1x4x4x91xf32, #tpu.memory_space<vmem>>, vector<1x1x4x91xf32>
    %7 = vector.shape_cast %6 : vector<1x1x4x91xf32> to vector<4x91xf32>
    %c1_9 = arith.constant 1 : index
    %c0_10 = arith.constant 0 : index
    %c0_11 = arith.constant 0 : index
    %8 = vector.load %arg3[%c1_9, %c0_10, %c0_11] : memref<9x8x4xf32, #tpu.memory_space<vmem>>, vector<1x8x4xf32>
    %9 = vector.shape_cast %8 : vector<1x8x4xf32> to vector<8x4xf32>
    %cst_12 = arith.constant dense<0.000000e+00> : vector<8x91xf32>
    %10 = tpu.matmul %9, %7, %cst_12 {dimension_numbers = #tpu.dot_dimension_numbers<[1], [0], [0], [1], [0, 0, 1, 1], [], []>} : vector<8x4xf32>, vector<4x91xf32>, vector<8x91xf32> -> vector<8x91xf32>
    %11 = vector.extract_strided_slice %10 {offsets = [0, 0], sizes = [8, 81], strides = [1, 1]} : vector<8x91xf32> to vector<8x81xf32>
    %12 = arith.addf %5, %11 : vector<8x81xf32>
    %c2 = arith.constant 2 : index
    %c0_13 = arith.constant 0 : index
    %c0_14 = arith.constant 0 : index
    %13 = vector.load %arg3[%c2, %c0_13, %c0_14] : memref<9x8x4xf32, #tpu.memory_space<vmem>>, vector<1x8x4xf32>
    %14 = vector.shape_cast %13 : vector<1x8x4xf32> to vector<8x4xf32>
    %cst_15 = arith.constant dense<0.000000e+00> : vector<8x91xf32>
    %15 = tpu.matmul %14, %1, %cst_15 {dimension_numbers = #tpu.dot_dimension_numbers<[1], [0], [0], [1], [0, 0, 1, 1], [], []>} : vector<8x4xf32>, vector<4x91xf32>, vector<8x91xf32> -> vector<8x91xf32>
    %16 = vector.extract_strided_slice %15 {offsets = [0, 1], sizes = [8, 81], strides = [1, 1]} : vector<8x91xf32> to vector<8x81xf32>
    %17 = arith.addf %12, %16 : vector<8x81xf32>
    %c0_16 = arith.constant 0 : index
    %c2_17 = arith.constant 2 : index
    %c0_18 = arith.constant 0 : index
    %c0_19 = arith.constant 0 : index
    %18 = vector.load %arg2[%c0_16, %c2_17, %c0_18, %c0_19] : memref<1x4x4x91xf32, #tpu.memory_space<vmem>>, vector<1x1x4x91xf32>
    %19 = vector.shape_cast %18 : vector<1x1x4x91xf32> to vector<4x91xf32>
    %c3 = arith.constant 3 : index
    %c0_20 = arith.constant 0 : index
    %c0_21 = arith.constant 0 : index
    %20 = vector.load %arg3[%c3, %c0_20, %c0_21] : memref<9x8x4xf32, #tpu.memory_space<vmem>>, vector<1x8x4xf32>
    %21 = vector.shape_cast %20 : vector<1x8x4xf32> to vector<8x4xf32>
    %cst_22 = arith.constant dense<0.000000e+00> : vector<8x91xf32>
    %22 = tpu.matmul %21, %19, %cst_22 {dimension_numbers = #tpu.dot_dimension_numbers<[1], [0], [0], [1], [0, 0, 1, 1], [], []>} : vector<8x4xf32>, vector<4x91xf32>, vector<8x91xf32> -> vector<8x91xf32>
    %23 = vector.extract_strided_slice %22 {offsets = [0, 0], sizes = [8, 81], strides = [1, 1]} : vector<8x91xf32> to vector<8x81xf32>
    %24 = arith.addf %17, %23 : vector<8x81xf32>
    %c0_23 = arith.constant 0 : index
    %c3_24 = arith.constant 3 : index
    %c0_25 = arith.constant 0 : index
    %c0_26 = arith.constant 0 : index
    %25 = vector.load %arg2[%c0_23, %c3_24, %c0_25, %c0_26] : memref<1x4x4x91xf32, #tpu.memory_space<vmem>>, vector<1x1x4x91xf32>
    %26 = vector.shape_cast %25 : vector<1x1x4x91xf32> to vector<4x91xf32>
    %c4 = arith.constant 4 : index
    %c0_27 = arith.constant 0 : index
    %c0_28 = arith.constant 0 : index
    %27 = vector.load %arg3[%c4, %c0_27, %c0_28] : memref<9x8x4xf32, #tpu.memory_space<vmem>>, vector<1x8x4xf32>
    %28 = vector.shape_cast %27 : vector<1x8x4xf32> to vector<8x4xf32>
    %cst_29 = arith.constant dense<0.000000e+00> : vector<8x91xf32>
    %29 = tpu.matmul %28, %26, %cst_29 {dimension_numbers = #tpu.dot_dimension_numbers<[1], [0], [0], [1], [0, 0, 1, 1], [], []>} : vector<8x4xf32>, vector<4x91xf32>, vector<8x91xf32> -> vector<8x91xf32>
    %30 = vector.extract_strided_slice %29 {offsets = [0, 0], sizes = [8, 81], strides = [1, 1]} : vector<8x91xf32> to vector<8x81xf32>
    %31 = arith.addf %24, %30 : vector<8x81xf32>
    %c5 = arith.constant 5 : index
    %c0_30 = arith.constant 0 : index
    %c0_31 = arith.constant 0 : index
    %32 = vector.load %arg3[%c5, %c0_30, %c0_31] : memref<9x8x4xf32, #tpu.memory_space<vmem>>, vector<1x8x4xf32>
    %33 = vector.shape_cast %32 : vector<1x8x4xf32> to vector<8x4xf32>
    %cst_32 = arith.constant dense<0.000000e+00> : vector<8x91xf32>
    %34 = tpu.matmul %33, %19, %cst_32 {dimension_numbers = #tpu.dot_dimension_numbers<[1], [0], [0], [1], [0, 0, 1, 1], [], []>} : vector<8x4xf32>, vector<4x91xf32>, vector<8x91xf32> -> vector<8x91xf32>
    %35 = vector.extract_strided_slice %34 {offsets = [0, 1], sizes = [8, 81], strides = [1, 1]} : vector<8x91xf32> to vector<8x81xf32>
    %36 = arith.addf %31, %35 : vector<8x81xf32>
    %c6 = arith.constant 6 : index
    %c0_33 = arith.constant 0 : index
    %c0_34 = arith.constant 0 : index
    %37 = vector.load %arg3[%c6, %c0_33, %c0_34] : memref<9x8x4xf32, #tpu.memory_space<vmem>>, vector<1x8x4xf32>
    %38 = vector.shape_cast %37 : vector<1x8x4xf32> to vector<8x4xf32>
    %cst_35 = arith.constant dense<0.000000e+00> : vector<8x91xf32>
    %39 = tpu.matmul %38, %1, %cst_35 {dimension_numbers = #tpu.dot_dimension_numbers<[1], [0], [0], [1], [0, 0, 1, 1], [], []>} : vector<8x4xf32>, vector<4x91xf32>, vector<8x91xf32> -> vector<8x91xf32>
    %40 = vector.extract_strided_slice %39 {offsets = [0, 9], sizes = [8, 81], strides = [1, 1]} : vector<8x91xf32> to vector<8x81xf32>
    %41 = arith.addf %36, %40 : vector<8x81xf32>
    %c7 = arith.constant 7 : index
    %c0_36 = arith.constant 0 : index
    %c0_37 = arith.constant 0 : index
    %42 = vector.load %arg3[%c7, %c0_36, %c0_37] : memref<9x8x4xf32, #tpu.memory_space<vmem>>, vector<1x8x4xf32>
    %43 = vector.shape_cast %42 : vector<1x8x4xf32> to vector<8x4xf32>
    %cst_38 = arith.constant dense<0.000000e+00> : vector<8x91xf32>
    %44 = tpu.matmul %43, %7, %cst_38 {dimension_numbers = #tpu.dot_dimension_numbers<[1], [0], [0], [1], [0, 0, 1, 1], [], []>} : vector<8x4xf32>, vector<4x91xf32>, vector<8x91xf32> -> vector<8x91xf32>
    %45 = vector.extract_strided_slice %44 {offsets = [0, 9], sizes = [8, 81], strides = [1, 1]} : vector<8x91xf32> to vector<8x81xf32>
    %46 = arith.addf %41, %45 : vector<8x81xf32>
    %c8 = arith.constant 8 : index
    %c0_39 = arith.constant 0 : index
    %c0_40 = arith.constant 0 : index
    %47 = vector.load %arg3[%c8, %c0_39, %c0_40] : memref<9x8x4xf32, #tpu.memory_space<vmem>>, vector<1x8x4xf32>
    %48 = vector.shape_cast %47 : vector<1x8x4xf32> to vector<8x4xf32>
    %cst_41 = arith.constant dense<0.000000e+00> : vector<8x91xf32>
    %49 = tpu.matmul %48, %1, %cst_41 {dimension_numbers = #tpu.dot_dimension_numbers<[1], [0], [0], [1], [0, 0, 1, 1], [], []>} : vector<8x4xf32>, vector<4x91xf32>, vector<8x91xf32> -> vector<8x91xf32>
    %50 = vector.extract_strided_slice %49 {offsets = [0, 10], sizes = [8, 81], strides = [1, 1]} : vector<8x91xf32> to vector<8x81xf32>
    %51 = arith.addf %46, %50 : vector<8x81xf32>
    %c0_42 = arith.constant 0 : index
    %c0_43 = arith.constant 0 : index
    %52 = vector.load %arg4[%c0_42, %c0_43] : memref<8x1xf32, #tpu.memory_space<vmem>>, vector<8x1xf32>
    %53 = vector.broadcast %52 : vector<8x1xf32> to vector<8x81xf32>
    %54 = arith.addf %51, %53 : vector<8x81xf32>
    %c0_44 = arith.constant 0 : index
    %c0_45 = arith.constant 0 : index
    %c0_46 = arith.constant 0 : index
    %55 = vector.load %arg5[%c0_44, %c0_45, %c0_46] : memref<1x8x81xf32, #tpu.memory_space<vmem>>, vector<1x8x81xf32>
    %56 = vector.shape_cast %55 : vector<1x8x81xf32> to vector<8x81xf32>
    %57 = vector.shape_cast %54 : vector<8x81xf32> to vector<1x8x81xf32>
    tpu.vector_store %arg5[%c0_44, %c0_45, %c0_46], %57 {strides = array<i32>} : memref<1x8x81xf32, #tpu.memory_space<vmem>>, vector<1x8x81xf32>,
    return
  }
  func.func @transform_0(%arg0: i32, %arg1: i32) -> (i32, i32, i32, i32) {
    %c0_i32 = arith.constant 0 : i32
    %c0_i32_0 = arith.constant 0 : i32
    %c0_i32_1 = arith.constant 0 : i32
    %c0_i32_2 = arith.constant 0 : i32
    return %arg1, %c0_i32, %c0_i32_0, %c0_i32_1 : i32, i32, i32, i32
  }
  func.func @transform_1(%arg0: i32, %arg1: i32) -> (i32, i32, i32) {
    %c0_i32 = arith.constant 0 : i32
    %c0_i32_0 = arith.constant 0 : i32
    %c0_i32_1 = arith.constant 0 : i32
    return %c0_i32, %arg0, %c0_i32_0 : i32, i32, i32
  }
  func.func @transform_2(%arg0: i32, %arg1: i32) -> (i32, i32) {
    %c0_i32 = arith.constant 0 : i32
    %c0_i32_0 = arith.constant 0 : i32
    return %arg0, %c0_i32 : i32, i32
  }
  func.func @transform_3(%arg0: i32, %arg1: i32) -> (i32, i32, i32) {
    %c0_i32 = arith.constant 0 : i32
    %c0_i32_0 = arith.constant 0 : i32
    return %arg1, %arg0, %c0_i32 : i32, i32, i32
  }
}

</mosaic_0001>

<bundles_post_ra>
// kernel: downsample_forward.1
= control target key start
LH: loop header
LB: loop body
LE: loop exit
PB: predicated region body
PF: predicated region fallthrough
CT: control target
= control target key end

     0   :  { %s1244_s12 = smov 0   ;;  %s1246_s13 = smov 0   ;;  %s1338_s0 = inlined_call_operand.vmem [shape: f32[2,4,4,91], index: 0, kind: input, shape index: {}]   ;;  %s1339_s1 = inlined_call_operand.vmem [shape: f32[9,8,4], index: 1, kind: input, shape index: {}]   ;;  %s1340_s2 = inlined_call_operand.vmem [shape: f32[8,1], index: 2, kind: input, shape index: {}]   ;;  %s1341_s3 = inlined_call_operand.vmem [shape: f32[2,8,81], index: 3, kind: output, shape index: {}]  }
   0x1   :  { %s1248_s14 = smov 0  }
   0x2 LB: > { %s22_s15 = sadd.s32 1, %s1212_s13  ;;  %p1063_p0 = scmp.ge.s32.totalorder %s1216_s14, 1  ;;  %s1216_s14 = sphi %s1248_s14, %s13_s14   ;;  %s1212_s13 = sphi %s1246_s13, %s1343_s13   ;;  %s1208_s12 = sphi %s1244_s12, %s1342_s12  }
   0x3   : > { %p23_p1 = scmp.ge.s32.totalorder %s22_s15, 2  ;;  %p169_p2 = scmp.lt.s32.totalorder %s1216_s14, 3 }
   0x5   : > { %s1345_s15 = smov (%p23_p1, %s22_s15), 0  ;;  %p170_p3 = pnand %p1063_p0, %p169_p2 }
   0x6   : > { %p203_p4 = scmp.lt.s32.totalorder (!%p170_p3), %s1208_s12, 1  ;;  %v1218_v0 = vmov (!%p170_p3), 0.0   ;;  %vm1219_vm0 = vmmov (!%p170_p3), 0   ;;  %v1220_v1 = vmov (!%p170_p3), 0   ;;  %v946_v2 = vld [vmem:[%s1340_s2] sm:$0xff] (!%p170_p3)  ;;  %vm229_vm1 = vcmask (!%p170_p3), 1043456  }
   0x7   : > { %173 = sbr.rel (%p170_p3) target bundleno = 367 (0x16f), region = 32  ;;  %1117 = vmatprep.subr.mxu0 (!%p170_p3), %v1218_v0  ;;  %1119 = vmatprep.mubr.msk.f32.mxu0 (!%p170_p3), %vm1219_vm0, %v1218_v0  ;;  %v224_v3 = vld [vmem:[%s1339_s1] sm:$0xff] (!%p170_p3)  ;;  %vm225_vm2 = vcmask (!%p170_p3), 31744   ;;  %v1070_v6 = vld [vmem:[%s1339_s1 + $0x8] sm:$0xff] (!%p170_p3)  ;;  %v1073_v8 = vld [vmem:[%s1339_s1 + $0x10] sm:$0xff] (!%p170_p3)  ;;  %s1221_s17 = smov (!%p170_p3), 127  }
   0x8   : > { %1122 = vmatprep.subr.mxu1 (!%p170_p3), %v1218_v0  ;;  %1124 = vmatprep.mubr.msk.f32.mxu1 (!%p170_p3), %vm1219_vm0, %v1218_v0  ;;  %v1077_v10 = vld [vmem:[%s1339_s1 + $0x18] sm:$0xff] (!%p170_p3)  ;;  %v1081_v11 = vld [vmem:[%s1339_s1 + $0x20] sm:$0xff] (!%p170_p3)  ;;  %v1084_v12 = vld [vmem:[%s1339_s1 + $0x28] sm:$0xff] (!%p170_p3)  ;;  %s1223_s19 = smov (!%p170_p3), 118   ;;  %vm953_vm3 = vcmask (!%p170_p3), 662528  }
   0x9   : > { %1192 = vset.pattern.permute.xlu1 (!%p170_p3), %v1220_v1  ;;  %1193 = vset.pattern.permute.xlu0 (!%p170_p3), %v1220_v1  ;;  %v1087_v13 = vld [vmem:[%s1339_s1 + $0x30] sm:$0xff] (!%p170_p3)  ;;  %v1090_v14 = vld [vmem:[%s1339_s1 + $0x38] sm:$0xff] (!%p170_p3)  ;;  %v1093_v15 = vld [vmem:[%s1339_s1 + $0x40] sm:$0xff] (!%p170_p3) }
   0xa   : > { %949 = vperm.xlu1 (!%p170_p3), %1192, %v946_v2  }
   0xe   : > { %s1347_s12 = smov (!%p203_p4, %s1208_s12), 1 }
   0xf   : > { %s1098_s18 = sshll.u32 %s1347_s12, 4  ;;  %s1066_s20 = sshll.u32 %s1347_s12, 3 }
  0x10   : > { %s207_s21 = scalar_lea.vmem %s1338_s0, %s1098_s18  ;;  %s1222_s18 = smov 119  }
  0x11   : > { %v223_v4 = vld [vmem:[%s207_s21] sm:$0xf]  ;;  %v1069_v5 = vld [vmem:[%s207_s21 + $0x4] sm:$0xf]  ;;  %v1076_v7 = vld [vmem:[%s207_s21 + $0x8] sm:$0xf]  ;;  %s222_s23 = scalar_lea.vmem %s1341_s3, %s1066_s20 }
  0x12   : > { %1118 = vmatpush3.msk.msra.mxu0 %vm229_vm1, %v223_v4  ;;  %1123 = vmatpush3.msk.msra.mxu1 %vm229_vm1, %v1069_v5  ;;  %v1080_v9 = vld [vmem:[%s207_s21 + $0xc] sm:$0xf] }
  0x13   : > { %1120 = vmatmul.mubr.msk.f32.vlgmr.msra.gmra.mrb[0].mxu0 %vm225_vm2, %v224_v3  ;;  %1127 = vmatprep.subr.mxu0 %v1218_v0 }
  0x14   : > { %1125 = vmatmul.mubr.msk.f32.vlgmr.msra.gmra.mrb[0].mxu1 %vm225_vm2, %v1070_v6  ;;  %1128 = vmatpush3.msk.msra.mxu0 %vm229_vm1, %v223_v4 }
  0x15   : > { %1132 = vmatprep.subr.mxu1 %v1218_v0  ;;  %1129 = vmatprep.mubr.msk.f32.mxu0 %vm1219_vm0, %v1218_v0 }
  0x16   : > { %1133 = vmatpush3.msk.msra.mxu1 %vm229_vm1, %v1076_v7  ;;  %1137 = vmatprep.subr.mxu0 %v1218_v0 }
  0x17   : > { %1130 = vmatmul.mubr.msk.f32.vlgmr.msra.gmra.mrb[2].mxu0 %vm225_vm2, %v1073_v8  ;;  %1134 = vmatprep.mubr.msk.f32.mxu1 %vm1219_vm0, %v1218_v0 }
  0x18   : > { %1138 = vmatpush3.msk.msra.mxu0 %vm229_vm1, %v1080_v9  ;;  %1135 = vmatmul.mubr.msk.f32.vlgmr.msra.gmra.mrb[2].mxu1 %vm225_vm2, %v1077_v10 }
  0x19   : > { %1142 = vmatprep.subr.mxu1 %v1218_v0  ;;  %1139 = vmatprep.mubr.msk.f32.mxu0 %vm1219_vm0, %v1218_v0 }
  0x1a   : > { %1143 = vmatpush3.msk.msra.mxu1 %vm229_vm1, %v1076_v7  ;;  %1147 = vmatprep.subr.mxu0 %v1218_v0 }
  0x1b   : > { %1140 = vmatmul.mubr.msk.f32.vlgmr.msra.gmra.mrb[4].mxu0 %vm225_vm2, %v1081_v11  ;;  %1144 = vmatprep.mubr.msk.f32.mxu1 %vm1219_vm0, %v1218_v0 }
  0x1c   : > { %1148 = vmatpush3.msk.msra.mxu0 %vm229_vm1, %v223_v4  ;;  %1145 = vmatmul.mubr.msk.f32.vlgmr.msra.gmra.mrb[4].mxu1 %vm225_vm2, %v1084_v12 }
  0x1d   : > { %1152 = vmatprep.subr.mxu1 %v1218_v0  ;;  %1149 = vmatprep.mubr.msk.f32.mxu0 %vm1219_vm0, %v1218_v0 }
  0x1e   : > { %1153 = vmatpush3.msk.msra.mxu1 %vm229_vm1, %v1069_v5  ;;  %1157 = vmatprep.subr.mxu0 %v1218_v0 }
  0x1f   : > { %1150 = vmatmul.mubr.msk.f32.vlgmr.msra.gmra.mrb[6].mxu0 %vm225_vm2, %v1087_v13  ;;  %1154 = vmatprep.mubr.msk.f32.mxu1 %vm1219_vm0, %v1218_v0 }
  0x20   : > { %1158 = vmatpush3.msk.msra.mxu0 %vm229_vm1, %v223_v4  ;;  %1155 = vmatmul.mubr.msk.f32.vlgmr.msra.gmra.mrb[6].mxu1 %vm225_vm2, %v1090_v14 }
  0x21   : > { %1159 = vmatprep.mubr.msk.f32.mxu0 %vm1219_vm0, %v1218_v0 }
  0x23   : > { %1160 = vmatmul.mubr.msk.f32.vlgmr.msra.gmra.mrb[8].mxu0 %vm225_vm2, %v1093_v15 }
  0x89   : > { %v950_v37 = vpop.permute.xlu1 %949 }
  0xe6   : > { %v299_v16 = vpop.f32.mrb[0].mxu0 }
  0xe7   : > { %v1121_v17 = vpop.f32.mrb[1].mxu0  ;;  %v379_v18 = vpop.f32.mrb[0].mxu1 }
  0xe8   : > { %v383_v19 = vadd.f32 %v379_v18, %v299_v16  ;;  %v1126_v20 = vpop.f32.mrb[1].mxu1 }
  0xea   : > { %v455_v21 = vpop.f32.mrb[2].mxu0 }
  0xeb   : > { %460 = vrot.lane.b32.xlu0 %v455_v21, %s1221_s17  ;;  %v1131_v22 = vpop.f32.mrb[3].mxu0  ;;  %v540_v23 = vpop.f32.mrb[2].mxu1 }
  0xec   : > { %v1136_v24 = vpop.f32.mrb[3].mxu1 }
  0xee   : > { %v621_v25 = vpop.f32.mrb[4].mxu0 }
  0xef   : > { %v1141_v26 = vpop.f32.mrb[5].mxu0  ;;  %v697_v27 = vpop.f32.mrb[4].mxu1 }
  0xf0   : > { %v1146_v28 = vpop.f32.mrb[5].mxu1  ;;  %702 = vrot.lane.b32.xlu0 %v697_v27, %s1221_s17 }
  0xf2   : > { %v777_v29 = vpop.f32.mrb[6].mxu0 }
  0xf3   : > { %782 = vrot.lane.b32.xlu1 %v777_v29, %s1222_s18  ;;  %v1151_v30 = vpop.f32.mrb[7].mxu0  ;;  %v857_v31 = vpop.f32.mrb[6].mxu1 }
  0xf4   : > { %v1156_v32 = vpop.f32.mrb[7].mxu1  ;;  %862 = vrot.lane.b32.xlu0 %v857_v31, %s1222_s18 }
  0xf6   : > { %v937_v33 = vpop.f32.mrb[8].mxu0 }
  0xf7   : > { %942 = vrot.lane.b32.xlu1 %v937_v33, %s1223_s19  ;;  %v1161_v34 = vpop.f32.mrb[9].mxu0 }
 0x15d   : > { %v461_v35 = vpop.permute.xlu0 %460 }
 0x15e   : > { %v463_v36 = vadd.f32 %v461_v35, %v383_v19 }
 0x160   : > { %v544_v38 = vadd.f32 %v540_v23, %v463_v36 }
 0x162   : > { %v703_v39 = vpop.permute.xlu0 %702  ;;  %v625_v40 = vadd.f32 %v621_v25, %v544_v38 }
 0x164   : > { %v705_v41 = vadd.f32 %v703_v39, %v625_v40 }
 0x165   : > { %v783_v42 = vpop.permute.xlu1 %782 }
 0x166   : > { %v785_v43 = vadd.f32 %v783_v42, %v705_v41  ;;  %v863_v44 = vpop.permute.xlu0 %862 }
 0x168   : > { %v865_v45 = vadd.f32 %v863_v44, %v785_v43 }
 0x169   : > { %v943_v46 = vpop.permute.xlu1 %942 }
 0x16a   : > { %v945_v47 = vadd.f32 %v943_v46, %v865_v45 }
 0x16c   : > { %v952_v48 = vadd.f32 %v950_v37, %v945_v47 }
 0x16e   : > { %954 = vst.msk [vmem:[%s222_s23] sm:$0xff] %vm953_vm3, %v952_v48 }
 0x16f PF: > { %s13_s14 = sadd.s32 1, %s1216_s14   ;;  %s1342_s12 = smov %s1212_s13 }
 0x170   : > { %p10_p5 = scmp.ge.s32.totalorder %s13_s14, 4   ;;  %s1343_s13 = smov %s1345_s15 }
 0x172   :  { %12 = sbr.rel (!%p10_p5) target bundleno = 2 (0x2), region = 79 }

</bundles_post_ra>
